<compile_context>
chip_gen: v6e
topology: v6e:2x2x1
jax: 0.10.0
libtpu: 0.0.40
codegen_flags: <defaults>
</compile_context>

<pallas_src>
import jax
import jax.numpy as jnp
from jax.experimental import pallas as pl
from jax.experimental.pallas import tpu as pltpu

NZ = 6                      # reduced/latent state dim (z1 = zs[:, 0])
NQ = 8                      # full configuration dim produced by zdyn.phi_inv
ALPHAS = (0.05, 0.08)       # per-barrier buffer `alpha` (deterministic in-script init)
BETAS = (0.35, 0.30)        # per-barrier buffer `beta`
N_BARRIERS = len(ALPHAS)
LANE = 128


def mask_barrier_kernel(wT_ref, b_ref, link_ref, coef_ref, beta2_ref, zs_ref, out_ref):
    # wT_ref   : (NQ, NZ)          f32 VMEM   (phi_inv weight, pre-transposed)
    # b_ref    : (NQ, 1)           f32 VMEM   (phi_inv bias)
    # link_ref : (NQ, 1)           f32 VMEM   (kinematics link lengths)
    # coef_ref : (N_BARRIERS, 1)   f32 VMEM   (alpha / beta^2 per barrier)
    # beta2_ref: (N_BARRIERS, 1)   f32 VMEM   (beta^2 per barrier)
    # zs_ref   : (NZ, TB)          f32 VMEM   (masked batch on the 128-lane axis)
    # out_ref  : (N_BARRIERS, TB)  f32 VMEM   (lane-dense violation slab)
    nz = zs_ref.shape[0]

    zs = zs_ref[...]                                   # one dense (NZ, TB) load
    wT = wT_ref[...]                                   # (NQ, NZ)

    # phi_inv stand-in: q = W^T zs + b, as NZ rank-1 updates on dense (NQ, TB) tiles.
    # TODO(synk): real phi_inv is an external dynamics module.
    q = b_ref[...] + wT[:, 0:1] * zs[0:1, :]           # (NQ,1)*(1,TB) -> (NQ,TB)
    for k in range(1, nz):
        q = q + wT[:, k:k + 1] * zs[k:k + 1, :]

    # p_z_swing stand-in: single sin on the dense tile + XLU sublane reduce.
    p_z = jnp.sum(link_ref[...] * jnp.sin(q), axis=0, keepdims=True)   # (1, TB)

    # Barriers, vectorized over N_BARRIERS:
    #   poly_i = -(z1 - beta_i)(z1 + beta_i) * alpha_i/beta_i^2 = -(z1^2 - beta_i^2)*coef_i
    # TODO(synk): real barrier.violation also consumes zdots via a jvp of h.
    z1 = zs[0:1, :]                                    # (1, TB)
    poly = -(z1 * z1 - beta2_ref[...]) * coef_ref[...] # (N_BARRIERS, TB)
    out_ref[...] = p_z - poly                          # single unmasked (N_BARRIERS, TB) vst


def mask_barrier_pair_forward(zs, zdots, w, b, link, *, tb=8192):
    """MaskBarrierPair.forward(zs, zdots): mask rows, evaluate every barrier's
    violation on the masked params, concatenate along the last dim."""
    # ---- mask stage (external `self.mask` module; synthetic stand-in) ----------
    # TODO(synk): real mask module is external; the data-dependent row count forces
    # this gather to run eagerly (un-jittable), matching PyTorch boolean indexing.
    keep = zs[:, 0] > 0.0
    zs_m = zs[keep]
    del zdots            # TODO(synk): stand-in violation ignores zdots; skip its gather.

    bm = int(zs_m.shape[0])
    nz = zs.shape[1]
    nq = w.shape[1]

    # ---- lane-dense, batch-tiled layout (no tail rows dropped) -----------------
    bm_pad = max(LANE, -(-bm // LANE) * LANE)                 # pad masked batch to lanes
    tb_eff = max(LANE, (min(tb, bm_pad) // LANE) * LANE)      # 128 <= tile <= tb, lane-mult
    if bm_pad >= 2 * LANE:                                    # >=2 grid steps -> v7x megacore
        tb_eff = min(tb_eff, max(LANE, ((bm_pad // 2) // LANE) * LANE))
    b_pad = -(-bm_pad // tb_eff) * tb_eff                     # grid divides evenly
    # TODO(synk): callers that already hold zs in (NZ, B) layout can skip this copy.
    zs_t = jnp.zeros((nz, b_pad), jnp.float32).at[:, :bm].set(zs_m.T)

    wT = jnp.asarray(w, jnp.float32).T                                       # (NQ, NZ)
    b2 = jnp.asarray(b, jnp.float32).reshape(nq, 1)                          # (NQ, 1)
    link2 = jnp.asarray(link, jnp.float32).reshape(nq, 1)                    # (NQ, 1)
    coef = jnp.array([a / (bt * bt) for a, bt in zip(ALPHAS, BETAS)],
                     jnp.float32).reshape(N_BARRIERS, 1)
    beta2 = jnp.array([bt * bt for bt in BETAS], jnp.float32).reshape(N_BARRIERS, 1)

    out_t = pl.pallas_call(
        mask_barrier_kernel,
        out_shape=jax.ShapeDtypeStruct((N_BARRIERS, b_pad), jnp.float32),
        grid_spec=pltpu.PrefetchScalarGridSpec(
            num_scalar_prefetch=0,
            grid=(b_pad // tb_eff,),
            in_specs=[
                pl.BlockSpec((nq, nz), lambda i: (0, 0)),            # w^T
                pl.BlockSpec((nq, 1), lambda i: (0, 0)),             # bias
                pl.BlockSpec((nq, 1), lambda i: (0, 0)),             # link lengths
                pl.BlockSpec((N_BARRIERS, 1), lambda i: (0, 0)),     # alpha/beta^2
                pl.BlockSpec((N_BARRIERS, 1), lambda i: (0, 0)),     # beta^2
                pl.BlockSpec((nz, tb_eff), lambda i: (0, i)),        # zs^T batch tile
            ],
            out_specs=pl.BlockSpec((N_BARRIERS, tb_eff), lambda i: (0, i)),
        ),
        compiler_params=pltpu.CompilerParams(
            dimension_semantics=("parallel",)),
    )(wT, b2, link2, coef, beta2, zs_t)

    # back to PyTorch's (masked_batch, n_barriers) orientation (wrapper-side plumbing)
    return out_t[:, :bm].T


def mask_barrier_pair_reference(zs, zdots, w, b, link):
    del zdots
    keep = zs[:, 0] > 0.0
    zs_m = zs[keep]
    qs = zs_m @ w + b.reshape(1, -1)
    p_z = jnp.sum(link.reshape(1, -1) * jnp.sin(qs), axis=-1, keepdims=True)
    z1 = zs_m[:, 0:1]
    cols = []
    for alpha, beta in zip(ALPHAS, BETAS):
        poly = -(z1 - beta) * (z1 + beta) * (alpha / (beta * beta))
        cols.append(p_z - poly)
    return jnp.concatenate(cols, axis=-1)


if __name__ == "__main__":
    B = 8
    key = jax.random.PRNGKey(0)
    k_zs, k_zd, k_w, k_b, k_l = jax.random.split(key, 5)

    zs = jax.random.normal(k_zs, (B, NZ), dtype=jnp.float32)
    zdots = jax.random.normal(k_zd, (B, NZ), dtype=jnp.float32)

    # deterministic synthetic "parameters" for the external phi_inv / kinematics
    w = 0.1 * jax.random.normal(k_w, (NZ, NQ), dtype=jnp.float32)
    b = 0.01 * jax.random.normal(k_b, (NQ,), dtype=jnp.float32)
    link = 0.5 + 0.1 * jax.random.normal(k_l, (NQ,), dtype=jnp.float32)

    out = mask_barrier_pair_forward(zs, zdots, w, b, link)
    out = jax.block_until_ready(out)

    ref = mask_barrier_pair_reference(zs, zdots, w, b, link)
    assert out.shape == ref.shape
    assert jnp.allclose(out, ref, atol=1e-5, rtol=1e-5)

    print("KERNEL_OK")
</pallas_src>

<mosaic_0001>
module attributes {stable_mosaic.version = 11 : i64} {
  func.func @mask_barrier_kernel(%arg0: i32, %arg1: memref<8x6xf32, #tpu.memory_space<vmem>>, %arg2: memref<8x1xf32, #tpu.memory_space<vmem>>, %arg3: memref<8x1xf32, #tpu.memory_space<vmem>>, %arg4: memref<2x1xf32, #tpu.memory_space<vmem>>, %arg5: memref<2x1xf32, #tpu.memory_space<vmem>>, %arg6: memref<6x128xf32, #tpu.memory_space<vmem>>, %arg7: memref<2x128xf32, #tpu.memory_space<vmem>>) attributes {dimension_semantics = [#tpu.dimension_semantics<parallel>], iteration_bounds = array<i64: 1>, scalar_prefetch = 0 : i64, scratch_operands = 0 : i64, tpu.core_type = #tpu.core_type<tc>, window_params = [{pipeline_mode = #tpu.pipeline_mode<synchronous>, transform_indices = @transform_0, window_bounds = array<i64: 8, 6>}, {pipeline_mode = #tpu.pipeline_mode<synchronous>, transform_indices = @transform_1, window_bounds = array<i64: 8, 1>}, {pipeline_mode = #tpu.pipeline_mode<synchronous>, transform_indices = @transform_2, window_bounds = array<i64: 8, 1>}, {pipeline_mode = #tpu.pipeline_mode<synchronous>, transform_indices = @transform_3, window_bounds = array<i64: 2, 1>}, {pipeline_mode = #tpu.pipeline_mode<synchronous>, transform_indices = @transform_4, window_bounds = array<i64: 2, 1>}, {transform_indices = @transform_5, window_bounds = array<i64: 6, 128>}, {transform_indices = @transform_6, window_bounds = array<i64: 2, 128>}]} {
    %c0 = arith.constant 0 : index
    %c0_0 = arith.constant 0 : index
    %0 = vector.load %arg6[%c0, %c0_0] : memref<6x128xf32, #tpu.memory_space<vmem>>, vector<6x128xf32>
    %c0_1 = arith.constant 0 : index
    %c0_2 = arith.constant 0 : index
    %1 = vector.load %arg1[%c0_1, %c0_2] : memref<8x6xf32, #tpu.memory_space<vmem>>, vector<8x6xf32>
    %c0_3 = arith.constant 0 : index
    %c0_4 = arith.constant 0 : index
    %2 = vector.load %arg2[%c0_3, %c0_4] : memref<8x1xf32, #tpu.memory_space<vmem>>, vector<8x1xf32>
    %3 = vector.extract_strided_slice %1 {offsets = [0, 0], sizes = [8, 1], strides = [1, 1]} : vector<8x6xf32> to vector<8x1xf32>
    %4 = vector.extract_strided_slice %0 {offsets = [0, 0], sizes = [1, 128], strides = [1, 1]} : vector<6x128xf32> to vector<1x128xf32>
    %5 = vector.broadcast %3 : vector<8x1xf32> to vector<8x128xf32>
    %6 = vector.broadcast %4 : vector<1x128xf32> to vector<8x128xf32>
    %7 = arith.mulf %5, %6 : vector<8x128xf32>
    %8 = vector.broadcast %2 : vector<8x1xf32> to vector<8x128xf32>
    %9 = arith.addf %8, %7 : vector<8x128xf32>
    %10 = vector.extract_strided_slice %1 {offsets = [0, 1], sizes = [8, 1], strides = [1, 1]} : vector<8x6xf32> to vector<8x1xf32>
    %11 = vector.extract_strided_slice %0 {offsets = [1, 0], sizes = [1, 128], strides = [1, 1]} : vector<6x128xf32> to vector<1x128xf32>
    %12 = vector.broadcast %10 : vector<8x1xf32> to vector<8x128xf32>
    %13 = vector.broadcast %11 : vector<1x128xf32> to vector<8x128xf32>
    %14 = arith.mulf %12, %13 : vector<8x128xf32>
    %15 = arith.addf %9, %14 : vector<8x128xf32>
    %16 = vector.extract_strided_slice %1 {offsets = [0, 2], sizes = [8, 1], strides = [1, 1]} : vector<8x6xf32> to vector<8x1xf32>
    %17 = vector.extract_strided_slice %0 {offsets = [2, 0], sizes = [1, 128], strides = [1, 1]} : vector<6x128xf32> to vector<1x128xf32>
    %18 = vector.broadcast %16 : vector<8x1xf32> to vector<8x128xf32>
    %19 = vector.broadcast %17 : vector<1x128xf32> to vector<8x128xf32>
    %20 = arith.mulf %18, %19 : vector<8x128xf32>
    %21 = arith.addf %15, %20 : vector<8x128xf32>
    %22 = vector.extract_strided_slice %1 {offsets = [0, 3], sizes = [8, 1], strides = [1, 1]} : vector<8x6xf32> to vector<8x1xf32>
    %23 = vector.extract_strided_slice %0 {offsets = [3, 0], sizes = [1, 128], strides = [1, 1]} : vector<6x128xf32> to vector<1x128xf32>
    %24 = vector.broadcast %22 : vector<8x1xf32> to vector<8x128xf32>
    %25 = vector.broadcast %23 : vector<1x128xf32> to vector<8x128xf32>
    %26 = arith.mulf %24, %25 : vector<8x128xf32>
    %27 = arith.addf %21, %26 : vector<8x128xf32>
    %28 = vector.extract_strided_slice %1 {offsets = [0, 4], sizes = [8, 1], strides = [1, 1]} : vector<8x6xf32> to vector<8x1xf32>
    %29 = vector.extract_strided_slice %0 {offsets = [4, 0], sizes = [1, 128], strides = [1, 1]} : vector<6x128xf32> to vector<1x128xf32>
    %30 = vector.broadcast %28 : vector<8x1xf32> to vector<8x128xf32>
    %31 = vector.broadcast %29 : vector<1x128xf32> to vector<8x128xf32>
    %32 = arith.mulf %30, %31 : vector<8x128xf32>
    %33 = arith.addf %27, %32 : vector<8x128xf32>
    %34 = vector.extract_strided_slice %1 {offsets = [0, 5], sizes = [8, 1], strides = [1, 1]} : vector<8x6xf32> to vector<8x1xf32>
    %35 = vector.extract_strided_slice %0 {offsets = [5, 0], sizes = [1, 128], strides = [1, 1]} : vector<6x128xf32> to vector<1x128xf32>
    %36 = vector.broadcast %34 : vector<8x1xf32> to vector<8x128xf32>
    %37 = vector.broadcast %35 : vector<1x128xf32> to vector<8x128xf32>
    %38 = arith.mulf %36, %37 : vector<8x128xf32>
    %39 = arith.addf %33, %38 : vector<8x128xf32>
    %c0_5 = arith.constant 0 : index
    %c0_6 = arith.constant 0 : index
    %40 = vector.load %arg3[%c0_5, %c0_6] : memref<8x1xf32, #tpu.memory_space<vmem>>, vector<8x1xf32>
    %41 = math.sin %39 : vector<8x128xf32>
    %42 = vector.broadcast %40 : vector<8x1xf32> to vector<8x128xf32>
    %43 = arith.mulf %42, %41 : vector<8x128xf32>
    %cst = arith.constant dense<0.000000e+00> : vector<128xf32>
    %44 = vector.multi_reduction <add>, %43, %cst [0] : vector<8x128xf32> to vector<128xf32>
    %45 = vector.shape_cast %44 : vector<128xf32> to vector<1x128xf32>
    %46 = vector.extract_strided_slice %0 {offsets = [0, 0], sizes = [1, 128], strides = [1, 1]} : vector<6x128xf32> to vector<1x128xf32>
    %47 = arith.mulf %46, %46 : vector<1x128xf32>
    %c0_7 = arith.constant 0 : index
    %c0_8 = arith.constant 0 : index
    %48 = vector.load %arg5[%c0_7, %c0_8] : memref<2x1xf32, #tpu.memory_space<vmem>>, vector<2x1xf32>
    %49 = vector.broadcast %47 : vector<1x128xf32> to vector<2x128xf32>
    %50 = vector.broadcast %48 : vector<2x1xf32> to vector<2x128xf32>
    %51 = arith.subf %49, %50 : vector<2x128xf32>
    %cst_9 = arith.constant 0.000000e+00 : f32
    %52 = vector.broadcast %cst_9 : f32 to vector<2x128xf32>
    %53 = arith.subf %52, %51 : vector<2x128xf32>
    %c0_10 = arith.constant 0 : index
    %c0_11 = arith.constant 0 : index
    %54 = vector.load %arg4[%c0_10, %c0_11] : memref<2x1xf32, #tpu.memory_space<vmem>>, vector<2x1xf32>
    %55 = vector.broadcast %54 : vector<2x1xf32> to vector<2x128xf32>
    %56 = arith.mulf %53, %55 : vector<2x128xf32>
    %57 = vector.broadcast %45 : vector<1x128xf32> to vector<2x128xf32>
    %58 = arith.subf %57, %56 : vector<2x128xf32>
    %c0_12 = arith.constant 0 : index
    %c0_13 = arith.constant 0 : index
    %59 = vector.load %arg7[%c0_12, %c0_13] : memref<2x128xf32, #tpu.memory_space<vmem>>, vector<2x128xf32>
    tpu.vector_store %arg7[%c0_12, %c0_13], %58 {strides = array<i32>} : memref<2x128xf32, #tpu.memory_space<vmem>>, vector<2x128xf32>,
    return
  }
  func.func @transform_0(%arg0: i32) -> (i32, i32) {
    %c0_i32 = arith.constant 0 : i32
    %c0_i32_0 = arith.constant 0 : i32
    %c0_i32_1 = arith.constant 0 : i32
    return %c0_i32, %c0_i32_0 : i32, i32
  }
  func.func @transform_1(%arg0: i32) -> (i32, i32) {
    %c0_i32 = arith.constant 0 : i32
    %c0_i32_0 = arith.constant 0 : i32
    %c0_i32_1 = arith.constant 0 : i32
    return %c0_i32, %c0_i32_0 : i32, i32
  }
  func.func @transform_2(%arg0: i32) -> (i32, i32) {
    %c0_i32 = arith.constant 0 : i32
    %c0_i32_0 = arith.constant 0 : i32
    %c0_i32_1 = arith.constant 0 : i32
    return %c0_i32, %c0_i32_0 : i32, i32
  }
  func.func @transform_3(%arg0: i32) -> (i32, i32) {
    %c0_i32 = arith.constant 0 : i32
    %c0_i32_0 = arith.constant 0 : i32
    %c0_i32_1 = arith.constant 0 : i32
    return %c0_i32, %c0_i32_0 : i32, i32
  }
  func.func @transform_4(%arg0: i32) -> (i32, i32) {
    %c0_i32 = arith.constant 0 : i32
    %c0_i32_0 = arith.constant 0 : i32
    %c0_i32_1 = arith.constant 0 : i32
    return %c0_i32, %c0_i32_0 : i32, i32
  }
  func.func @transform_5(%arg0: i32) -> (i32, i32) {
    %c0_i32 = arith.constant 0 : i32
    %c0_i32_0 = arith.constant 0 : i32
    return %c0_i32, %arg0 : i32, i32
  }
  func.func @transform_6(%arg0: i32) -> (i32, i32) {
    %c0_i32 = arith.constant 0 : i32
    %c0_i32_0 = arith.constant 0 : i32
    return %c0_i32, %arg0 : i32, i32
  }
}

</mosaic_0001>

<bundles_post_ra>
// kernel: tpu_custom_call.1
= control target key start
LH: loop header
LB: loop body
LE: loop exit
PB: predicated region body
PF: predicated region fallthrough
CT: control target
= control target key end

     0   :  { %v301_v1 = vmov 1   ;;  %v302_v2 = vmov 0   ;;  %s413_s0 = inlined_call_operand.vmem [shape: f32[8,6], index: 0, kind: input, shape index: {}]   ;;  %s414_s1 = inlined_call_operand.vmem [shape: f32[8,1], index: 1, kind: input, shape index: {}]   ;;  %s415_s2 = inlined_call_operand.vmem [shape: f32[8,1], index: 2, kind: input, shape index: {}]   ;;  %s416_s3 = inlined_call_operand.vmem [shape: f32[2,1], index: 3, kind: input, shape index: {}]   ;;  %s417_s4 = inlined_call_operand.vmem [shape: f32[2,1], index: 4, kind: input, shape index: {}]   ;;  %s418_s5 = inlined_call_operand.vmem [shape: f32[6,128], index: 5, kind: input, shape index: {}]   ;;  %s419_s6 = inlined_call_operand.hbm [shape: f32[2,128], index: 6, kind: output, shape index: {}]  }
   0x1   :  { %v25_v0 = vld [vmem:[%s413_s0] sm:$0xff]  ;;  %268 = vset.pattern.permute.xlu1 %v301_v1  ;;  %267 = vset.pattern.permute.xlu0 %v302_v2 }
   0x2   :  { %44 = vperm.xlu1 %268, %v25_v0   ;;  %29 = vperm.xlu0 %267, %v25_v0  }
   0x3   :  { %11 = vsyncpa [#allocation3], 0  ;;  %v26_v3 = vld [vmem:[%s414_s1] sm:$0xff]  ;;  %v303_v4 = vmov 2   ;;  %v304_v5 = vmov 3   ;;  %v305_v6 = vmov 4   ;;  %v32_v11 = vlaneseq }
   0x4   :  { %v93_v7 = vld [vmem:[%s415_s2] sm:$0xff]  ;;  %v306_v8 = vmov 5   ;;  %v307_v56 = vmov 2102212464   ;;  %v308_v58 = vmov 920167782  }
   0x5   :  { %v211_v9 = vld [vmem:[%s417_s4] sm:$0x3]  ;;  %v364_v12 = vshrl.u32 %v32_v11, 7  ;;  %v309_v62 = vmov 1326507024  }
   0x6   :  { %269 = vset.pattern.permute.xlu1 %v303_v4  ;;  %39 = vperm.xlu0 %267, %v26_v3   ;;  %v223_v10 = vld [vmem:[%s416_s3] sm:$0x3]  ;;  %s313_s3 = smov [#allocation2]  }
   0x7   :  { %54 = vperm.xlu1 %269, %v25_v0   ;;  %v34_v13 = vsub.s32 0, %v364_v12  ;;  %v370_v14 = vld [vmem:[%s418_s5] sm:$0x3f]  ;;  %v49_v15 = vsub.s32 1, %v364_v12  ;;  %v59_v17 = vsub.s32 2, %v364_v12  ;;  %v69_v23 = vsub.s32 3, %v364_v12 }
   0x8   :  { %v79_v25 = vsub.s32 4, %v364_v12  ;;  %v89_v33 = vsub.s32 5, %v364_v12  ;;  %s238_s4 = sshll.u32 %s313_s3, 4  ;;  %s239_s4 = int_to_ptr.vmem [resolvable:$true] %s238_s4 }
   0x9   :  { %v35_v16 = vrot.slane %v370_v14, %v34_v13  ;;  %v50_v20 = vrot.slane %v370_v14, %v49_v15  ;;  %v60_v22 = vrot.slane %v370_v14, %v59_v17  ;;  %v70_v30 = vrot.slane %v370_v14, %v69_v23  ;;  %s279_s5 = scalar_lea.vmem %s239_s4, 32  ;;  %p284_p1 = scmp.lt.s32.totalorder %s239_s4, %s239_s4 }
   0xa   :  { %270 = vset.pattern.permute.xlu0 %v304_v5  ;;  %v80_v32 = vrot.slane %v370_v14, %v79_v25  ;;  %v90_v40 = vrot.slane %v370_v14, %v89_v33  ;;  %v312_v5 = vmov 2131351028   ;;  %p280_p0 = scmp.ne.s32.totalorder %s239_s4, %s279_s5  ;;  %p285_p2 = scmp.lt.s32.totalorder %s279_s5, %s279_s5 }
   0xb   :  { %271 = vset.pattern.permute.xlu1 %v305_v6  ;;  %64 = vperm.xlu0 %270, %v25_v0  }
   0xc   :  { %74 = vperm.xlu1 %271, %v25_v0   ;;  %p286_p3 = por %p285_p2, %p284_p1 }
   0xe   :  { %p287_p4 = pnand %p286_p3, %p280_p0 }
   0xf   :  { %273 = vset.pattern.permute.xlu0 %v302_v2 }
  0x10   :  { %272 = vset.pattern.permute.xlu1 %v306_v8  ;;  %200 = vperm.xlu0 %273, %v93_v7  }
  0x11   :  { %84 = vperm.xlu1 %272, %v25_v0   ;;  %v310_v0 = vmov 683565275  }
  0x15   :  { %274 = vset.pattern.permute.xlu1 %v302_v2  ;;  %v311_v2 = vmov 2475754826  }
  0x16   :  { %218 = vperm.xlu1 %274, %v211_v9  }
  0x1a   :  { %226 = vperm.xlu1 %274, %v223_v10  }
  0x7d   :  { %v45_v18 = vpop.permute.xlu1 %44  ;;  %v30_v19 = vpop.permute.xlu0 %29 }
  0x7e   :  { %v36_v21 = vmul.f32 %v35_v16, %v30_v19  ;;  %v51_v26 = vmul.f32 %v50_v20, %v45_v18 }
  0x81   :  { %v40_v24 = vpop.permute.xlu0 %39 }
  0x82   :  { %v42_v27 = vadd.f32 %v40_v24, %v36_v21  ;;  %v55_v28 = vpop.permute.xlu1 %54 }
  0x83   :  { %v61_v29 = vmul.f32 %v60_v22, %v55_v28 }
  0x84   :  { %v52_v31 = vadd.f32 %v51_v26, %v42_v27 }
  0x86   :  { %v62_v34 = vadd.f32 %v61_v29, %v52_v31  ;;  %v65_v35 = vpop.permute.xlu0 %64 }
  0x87   :  { %v71_v36 = vmul.f32 %v70_v30, %v65_v35  ;;  %v75_v37 = vpop.permute.xlu1 %74 }
  0x88   :  { %v81_v39 = vmul.f32 %v80_v32, %v75_v37 }
  0x89   :  { %v72_v38 = vadd.f32 %v71_v36, %v62_v34 }
  0x8b   :  { %v82_v42 = vadd.f32 %v81_v39, %v72_v38 }
  0x8c   :  { %v85_v41 = vpop.permute.xlu1 %84 }
  0x8d   :  { %v91_v43 = vmul.f32 %v90_v40, %v85_v41 }
  0x8f   :  { %v385_v44 = vadd.f32 %v91_v43, %v82_v42 }
  0x91   :  { %v97_v45 = vand.u32 2139095040, %v385_v44  ;;  %v94_v46 = vand.u32 2147483647, %v385_v44  ;;  %vm96_vm7 = vcmp.lt.s32.totalorder %v385_v44, 0  ;;  %vm186_vm12 = vweird.f32 %v385_v44 }
  0x93   :  { %v98_v47 = vshrl.u32 %v97_v45, 23  ;;  %v101_v49 = vand.u32 8388607, %v94_v46  ;;  %vm95_vm8 = vcmp.le.f32.partialorder %v94_v46, 0.7853982  ;;  %v201_v46 = vpop.permute.xlu0 %200 }
  0x95   :  { %v246_v48 = vadd.s32 4294967169, %v98_v47  ;;  %v102_v52 = vor.u32 8388608, %v101_v49 }
  0x97   :  { %v104_v50 = vadd.s32 1, %v246_v48  ;;  %v142_v60 = vshll.u32 %v102_v52, 8 }
  0x99   :  { %vm105_vm0 = vcmp.gt.s32.totalorder %v104_v50, 0 }
  0x9a   :  { %v106_v51 = vsel %vm105_vm0, %v104_v50, 0 }
  0x9b   :  { %v108_v53 = vand.u32 31, %v106_v51  ;;  %v107_v54 = vshrl.u32 %v106_v51, 5 }
  0x9d   :  { %v109_v55 = vsub.s32 32, %v108_v53  ;;  %v120_v57 = vshll.u32 %v307_v56, %v108_v53  ;;  %v123_v59 = vshll.u32 %v308_v58, %v108_v53  ;;  %v111_v1 = vshll.u32 %v310_v0, %v108_v53 }
  0x9e   :  { %v114_v4 = vshll.u32 %v311_v2, %v108_v53  ;;  %v117_v7 = vshll.u32 %v312_v5, %v108_v53  ;;  %vm129_vm1 = vcmp.lt.s32.totalorder %v107_v54, 4  ;;  %vm126_vm2 = vcmp.lt.s32.totalorder %v107_v54, 1 }
  0x9f   :  { %v121_v61 = vshrl.u32 %v308_v58, %v109_v55  ;;  %v124_v63 = vshrl.u32 %v309_v62, %v109_v55  ;;  %v112_v3 = vshrl.u32 %v311_v2, %v109_v55  ;;  %v115_v6 = vshrl.u32 %v312_v5, %v109_v55 }
  0xa0   :  { %v118_v8 = vshrl.u32 %v307_v56, %v109_v55  ;;  %v110_v15 = vshrl.u32 %v310_v0, %v109_v55  ;;  %vm127_vm3 = vcmp.lt.s32.totalorder %v107_v54, 2  ;;  %vm128_vm4 = vcmp.lt.s32.totalorder %v107_v54, 3 }
  0xa1   :  { %v122_v9 = vor.u32 %v121_v61, %v120_v57  ;;  %v125_v10 = vor.u32 %v124_v63, %v123_v59  ;;  %v113_v11 = vor.u32 %v112_v3, %v111_v1  ;;  %v116_v16 = vor.u32 %v115_v6, %v114_v4 }
  0xa2   :  { %v119_v17 = vor.u32 %v118_v8, %v117_v7 }
  0xa3   :  { %v135_v18 = vsel %vm129_vm1, %v122_v9, 920167782  ;;  %v139_v19 = vsel %vm129_vm1, %v125_v10, 1326507024  ;;  %v134_v21 = vsel %vm126_vm2, %v113_v11, %v116_v16  ;;  %v130_v24 = vsel %vm126_vm2, %v110_v15, %v113_v11 }
  0xa4   :  { %v131_v20 = vsel %vm129_vm1, %v119_v17, 2102212464  ;;  %v136_v22 = vsel %vm128_vm4, %v119_v17, %v135_v18  ;;  %v138_v23 = vsel %vm126_vm2, %v116_v16, %v119_v17  ;;  %v140_v27 = vsel %vm128_vm4, %v122_v9, %v139_v19  ;;  %v219_v19 = vpop.permute.xlu1 %218 }
  0xa5   :  { %v132_v25 = vsel %vm128_vm4, %v116_v16, %v131_v20  ;;  %v137_v26 = vsel %vm127_vm3, %v134_v21, %v136_v22  ;;  %v141_v28 = vsel %vm127_vm3, %v138_v23, %v140_v27  ;;  %v210_v10 = vmul.f32 %v370_v14, %v370_v14 }
  0xa6   :  { %v391_v29 = vmul.u32.u64.low %v142_v60, %v137_v26  ;;  %v392_v30 = vmul.u32.u64.high %v142_v60, %v137_v26, %v391_v29  ;;  %v394_v31 = vmul.u32.u64.low %v142_v60, %v141_v28  ;;  %v395_v32 = vmul.u32.u64.high %v142_v60, %v141_v28, %v394_v31 }
  0xa7   :  { %v133_v33 = vsel %vm127_vm3, %v130_v24, %v132_v25  ;;  %v215_v18 = vrot.slane %v210_v10, %v34_v13 }
  0xa8   :  { %v152_v34 = vadd.s32 1, %v392_v30  ;;  %v149_v35 = vmul.u32 %v142_v60, %v133_v33  ;;  %vm151_vm5 = vc.u32 %v395_v32, %v391_v29  ;;  %v150_v49 = vadd.s32 %v391_v29, %v395_v32  ;;  %v227_v26 = vpop.permute.xlu1 %226 }
  0xa9   :  { %v221_v22 = vsub.f32 %v215_v18, %v219_v19 }
  0xaa   :  { %v153_v36 = vsel %vm151_vm5, %v152_v34, %v392_v30 }
  0xab   :  { %v154_v37 = vadd.s32 %v153_v36, %v149_v35  ;;  %v222_v25 = vsub.f32 0.0, %v221_v22 }
  0xad   :  { %v155_v38 = vadd.s32 536870912, %v154_v37  ;;  %v229_v27 = vmul.f32 %v227_v26, %v222_v25 }
  0xaf   :  { %v156_v39 = vshrl.u32 %v155_v38, 30 }
  0xb1   :  { %v157_v40 = vshll.u32 %v156_v39, 30  ;;  %v180_v62 = vsub.s32 4, %v156_v39 }
  0xb3   :  { %v158_v41 = vsub.s32 %v154_v37, %v157_v40  ;;  %v181_v1 = vsel %vm96_vm7, %v180_v62, %v156_v39 }
  0xb4   :  { %v183_v2 = vsel %vm95_vm8, 0, %v181_v1 }
  0xb5   :  { %v160_v42 = vsub.s32 0, %v158_v41  ;;  %v187_v3 = vadd.s32 3, %v183_v2 }
  0xb7   :  { %v247_v43 = vmin.u32 %v160_v42, %v158_v41  ;;  %v188_v4 = vand.u32 3, %v187_v3 }
  0xb9   :  { %v162_v45 = vclz %v247_v43  ;;  %vm193_vm9 = vcmp.eq.s32.totalorder %v188_v4, 2  ;;  %vm190_vm10 = vcmp.eq.s32.totalorder %v188_v4, 0  ;;  %vm189_vm11 = vcmp.lt.s32.totalorder %v188_v4, 2 }
  0xbb   :  { %v248_v47 = vadd.s32 4294967294, %v162_v45 }
  0xbd   :  { %vm249_vm6 = vcmp.lt.s32.totalorder %v248_v47, 0 }
  0xbe   :  { %v165_v48 = vsel %vm249_vm6, 0, %v248_v47 }
  0xbf   :  { %v166_v50 = vsub.s32 32, %v165_v48  ;;  %v170_v51 = vsub.s32 4294967266, %v165_v48  ;;  %v167_v52 = vshll.u32 %v158_v41, %v165_v48 }
  0xc1   :  { %v168_v53 = vshrl.u32 %v150_v49, %v166_v50  ;;  %v171_v54 = vadd.s32 127, %v170_v51 }
  0xc3   :  { %v169_v55 = vor.u32 %v168_v53, %v167_v52  ;;  %v172_v56 = vshll.u32 %v171_v54, 23 }
  0xc5   :  { %v173_v57 = vor.u32 4788187, %v172_v56  ;;  %v176_v59 = vcvt.s32.f32 %v169_v55 }
  0xc7   :  { %v174_v58 = vand.u32 2147483647, %v173_v57 }
  0xc9   :  { %v177_v60 = vmul.f32 %v176_v59, %v174_v58 }
  0xcb   :  { %v178_v61 = vxor.u32 2147483648, %v177_v60 }
  0xcd   :  { %v179_v63 = vsel %vm96_vm7, %v178_v61, %v177_v60 }
  0xce   :  { %v182_v0 = vsel %vm95_vm8, %v385_v44, %v179_v63 }
  0xcf   :  { %275 = vcosq.f32 %v182_v0 }
  0xd0   :  { %277 = vsinq.f32 %v182_v0 }
  0xdc   :  { %v276_v5 = vpop.eup %275 }
  0xdd   :  { %v278_v6 = vpop.eup %277  ;;  %v194_v7 = vxor.u32 2147483648, %v276_v5 }
  0xde   :  { %v191_v8 = vxor.u32 2147483648, %v278_v6 }
  0xdf   :  { %v195_v9 = vsel %vm193_vm9, %v194_v7, %v278_v6 }
  0xe0   :  { %v192_v11 = vsel %vm190_vm10, %v276_v5, %v191_v8 }
  0xe1   :  { %v196_v15 = vsel %vm189_vm11, %v192_v11, %v195_v9 }
  0xe2   :  { %v197_v16 = vsel %vm186_vm12, nan, %v196_v15 }
  0xe3   :  { %v203_v17 = vmul.f32 %v201_v46, %v197_v16 }
  0xe5   :  { %v204_v20 = vrot.slane %v203_v17, 4 }
  0xe7   :  { %v205_v21 = vadd.f32 %v204_v20, %v203_v17 }
  0xe9   :  { %v206_v23 = vrot.slane %v205_v21, 2 }
  0xeb   :  { %v207_v24 = vadd.f32 %v206_v23, %v205_v21 }
  0xed   :  { %v208_v14 = vrot.slane %v207_v24, 1 }
  0xef   :  { %v209_v28 = vadd.f32 %v208_v14, %v207_v24 }
  0xf1   :  { %v230_v44 = vsub.f32 %v209_v28, %v229_v27 }
  0xf3   :  { %231 = vst [vmem:[#allocation2] sm:$0x3] %v230_v44 }
  0xf4   :  { %290 = shalt.err (!%p287_p4)
}
  0xf5   :  { %241 = dma.vmem_to_hbm [thread:$0]  %s239_s4, 32, %s419_s6, [#allocation3]  }
  0xf6   :  { %299 = dma.done.wait [#allocation3], 32  }
  0xf7   :  { %300 = vsyncadd [#allocation3], 4294967264 }
  0xf8   :  { %245 = vsyncpa [#allocation3], 1 }

</bundles_post_ra>
